<compile_context>
chip_gen: v6e
topology: v6e:2x2x1
jax: 0.10.0
libtpu: 0.0.40
codegen_flags: <defaults>
</compile_context>

<pallas_src>
import math
import functools

import jax
import jax.numpy as jnp
from jax import lax
from jax.experimental import pallas as pl
from jax.experimental.pallas import tpu as pltpu


# TODO(synk): per-generation tuning — raise toward ~96 MiB on v5e/v6e (128 MiB physical
# VMEM) for bigger projection tiles; keep <= ~48 MiB on v7x (64 MiB per TensorCore).
_VMEM_LIMIT = 48 * 1024 * 1024


# ------------------------------ helpers ------------------------------------ #

def _round_up(n, m):
    return ((n + m - 1) // m) * m


def _pick_tile(n, cap, align):
    """Tile for a paddable dim: returns (tile, n_padded).  Either the full extent
    (always a legal BlockSpec) or an `align`-multiple tile dividing the padded dim."""
    if n <= cap:
        return n, n
    tile = max(align, (cap // align) * align)
    return tile, _round_up(n, tile)


def _seq_tile(n, cap):
    """Tile along a sequence dim that must divide n exactly (keys cannot be padded):
    prefer 128-multiples, then 8-multiples, else fall back to the full extent."""
    if n <= cap:
        return n
    fallback = None
    for t in range(min(cap, n), 7, -1):
        if n % t == 0 and t % 8 == 0:
            if t % 128 == 0:
                return t
            if fallback is None:
                fallback = t
    return fallback if fallback is not None else n


def _pad2(x, shape):
    pads = [(0, s - d) for s, d in zip(shape, x.shape)]
    if any(p[1] for p in pads):
        return jnp.pad(x, pads)
    return x


# ------------------------------ kernels ------------------------------------ #

def linear_kernel(x_ref, w_ref, b_ref, o_ref):
    """y = x @ W + b  (bf16 operands, f32 accumulation; W pre-transposed/fused)."""
    o_ref[...] = (jnp.dot(x_ref[...], w_ref[...],
                          preferred_element_type=jnp.float32)
                  + b_ref[...]).astype(o_ref.dtype)


def flash_attn_kernel(q_ref, k_ref, v_ref, o_ref, m_sc, l_sc, acc_sc):
    """Flash-style online-softmax attention for one (batch*head, q-tile).

    grid = (B*H, T//tq, S//tk); kv axis is the 'arbitrary' reduction axis (usually a
    single step since tk == T when K/V fit in VMEM).  q is pre-scaled; q/k/v are bf16,
    accumulation is f32.
    """
    ki = pl.program_id(2)

    @pl.when(ki == 0)
    def _():
        m_sc[...] = jnp.full(m_sc.shape, -jnp.inf, m_sc.dtype)
        l_sc[...] = jnp.zeros(l_sc.shape, l_sc.dtype)
        acc_sc[...] = jnp.zeros(acc_sc.shape, acc_sc.dtype)

    # q @ k^T without materializing a transpose: contract the last dims.
    s = lax.dot_general(q_ref[...], k_ref[...], (((1,), (1,)), ((), ())),
                        preferred_element_type=jnp.float32)          # (tq, tk) f32

    m_prev = m_sc[...]
    m_new = jnp.maximum(m_prev, jnp.max(s, axis=-1, keepdims=True))
    alpha = jnp.exp(m_prev - m_new)
    p = jnp.exp(s - m_new)
    l_sc[...] = alpha * l_sc[...] + jnp.sum(p, axis=-1, keepdims=True)
    acc_sc[...] = alpha * acc_sc[...] + jnp.dot(p.astype(v_ref.dtype), v_ref[...],
                                                preferred_element_type=jnp.float32)
    m_sc[...] = m_new

    @pl.when(ki == pl.num_programs(2) - 1)
    def _():
        inv_l = pl.reciprocal(l_sc[...], approx=True)   # EUP slot, effectively free
        o_ref[...] = (acc_sc[...] * inv_l).astype(o_ref.dtype)


def attn_weights_kernel(q_ref, k_ref, v_ref, o_ref, pw_ref, *, inv_b):
    """Attention for one (head, q-tile, batch) step with in-kernel batch-mean of probs.

    grid = (H, T//tq, B); B is the inner 'arbitrary' axis, pw_ref (tq, T) stays
    VMEM-resident across it and accumulates sum_b probs / B.
    """
    b = pl.program_id(2)

    s = lax.dot_general(q_ref[...], k_ref[...], (((1,), (1,)), ((), ())),
                        preferred_element_type=jnp.float32)          # (tq, T) f32
    m = jnp.max(s, axis=-1, keepdims=True)
    e = jnp.exp(s - m)
    p = e * pl.reciprocal(jnp.sum(e, axis=-1, keepdims=True), approx=False)

    o_ref[...] = jnp.dot(p.astype(v_ref.dtype), v_ref[...],
                         preferred_element_type=jnp.float32).astype(o_ref.dtype)

    contrib = p * inv_b

    @pl.when(b == 0)
    def _():
        pw_ref[...] = contrib

    @pl.when(b > 0)
    def _():
        pw_ref[...] = pw_ref[...] + contrib


# ------------------------------ wrappers ------------------------------------ #

def _tiled_linear(x2d, w_t, bias_row, out_dtype, *, tm_cap=512, tn_cap=1024):
    """M/N-tiled y = x @ W + b with (8,128)-aligned tiles (pad + slice for remainders)."""
    M, K = x2d.shape
    N = w_t.shape[1]
    tm, Mp = _pick_tile(M, tm_cap, 8)
    tn, Np = _pick_tile(N, tn_cap, 128)
    xp = _pad2(x2d, (Mp, K))
    wp = _pad2(w_t, (K, Np))
    bp = _pad2(bias_row, (1, Np))
    # TODO(synk): tile K with a VMEM f32 accumulator if embed_dim becomes very large.
    out = pl.pallas_call(
        linear_kernel,
        out_shape=jax.ShapeDtypeStruct((Mp, Np), out_dtype),
        grid=(Mp // tm, Np // tn),
        in_specs=[pl.BlockSpec((tm, K), lambda i, j: (i, 0)),
                  pl.BlockSpec((K, tn), lambda i, j: (0, j)),
                  pl.BlockSpec((1, tn), lambda i, j: (0, j))],
        out_specs=pl.BlockSpec((tm, tn), lambda i, j: (i, j)),
        compiler_params=pltpu.CompilerParams(
            dimension_semantics=("parallel", "parallel"),
            vmem_limit_bytes=_VMEM_LIMIT),
    )(xp, wp, bp)
    if Mp != M or Np != N:
        out = out[:M, :N]
    return out


def prepare_params(params, num_heads):
    """One-time fusion at parameter-load time: concat q/k/v weights (q-scaling folded
    into the q columns), pre-transpose, and cast matmul operands to bf16."""
    E = params["wq"].shape[0]
    Hd = E // num_heads
    scaling = Hd ** (-0.5)
    wqkv = jnp.concatenate([params["wq"].T * scaling,
                            params["wk"].T,
                            params["wv"].T], axis=1).astype(jnp.bfloat16)   # (E, 3E)
    bqkv = jnp.concatenate([params["bq"] * scaling,
                            params["bk"],
                            params["bv"]]).reshape(1, 3 * E).astype(jnp.float32)
    wo_t = params["wo"].T.astype(jnp.bfloat16)                              # (E, E)
    bo = params["bo"].reshape(1, E).astype(jnp.float32)
    return {"wqkv": wqkv, "bqkv": bqkv, "wo_t": wo_t, "bo": bo}


def multihead_self_attention(query, prepared, num_heads, need_weights=True):
    """query: (tgt_len, bsz, embed_dim) float32.

    Returns (attn, attn_weights) matching the PyTorch module:
      attn:         (tgt_len, bsz, embed_dim) float32
      attn_weights: (num_heads, tgt_len, src_len) float32 (mean over batch) or None.
    """
    T, B, E = query.shape
    H = num_heads
    Hd = E // H
    assert H * Hd == E, "embed_dim must be divisible by num_heads"
    M = T * B

    # --- fused, tiled QKV projection (bf16 operands, f32 accumulation, bf16 output) ---
    x2d = query.reshape(M, E).astype(jnp.bfloat16)
    qkv2d = _tiled_linear(x2d, prepared["wqkv"], prepared["bqkv"], jnp.bfloat16)  # (M, 3E)

    # One contiguous-layout transpose so every attention DMA is a dense (tile, Hd)
    # block per (batch, head); channel 0/1/2 of the leading axis selects q/k/v.
    qkv = qkv2d.reshape(T, B, 3, H, Hd).transpose(2, 1, 3, 0, 4)   # (3, B, H, T, Hd)

    tq = _seq_tile(T, 256)

    if need_weights:
        # Full-softmax path that also produces the batch-mean attention weights.
        q_spec = pl.BlockSpec((None, None, None, tq, Hd),
                              lambda h, qi, b: (0, b, h, qi, 0))
        k_spec = pl.BlockSpec((None, None, None, T, Hd),
                              lambda h, qi, b: (1, b, h, 0, 0))
        v_spec = pl.BlockSpec((None, None, None, T, Hd),
                              lambda h, qi, b: (2, b, h, 0, 0))
        o_spec = pl.BlockSpec((None, None, tq, Hd),
                              lambda h, qi, b: (b, h, qi, 0))
        pw_spec = pl.BlockSpec((None, tq, T), lambda h, qi, b: (h, qi, 0))  # resident over b

        attn_heads, attn_weights = pl.pallas_call(
            functools.partial(attn_weights_kernel, inv_b=1.0 / B),
            out_shape=(jax.ShapeDtypeStruct((B, H, T, Hd), jnp.bfloat16),
                       jax.ShapeDtypeStruct((H, T, T), jnp.float32)),
            grid=(H, T // tq, B),
            in_specs=[q_spec, k_spec, v_spec],
            out_specs=(o_spec, pw_spec),
            compiler_params=pltpu.CompilerParams(
                dimension_semantics=("parallel", "parallel", "arbitrary"),
                vmem_limit_bytes=_VMEM_LIMIT),
        )(qkv, qkv, qkv)
    else:
        # Flash path: K/V fetched once per (b, h) when they fit (tk == T), otherwise an
        # aligned divisor with online-softmax accumulation across kv tiles.
        tk = T if 2 * T * Hd * 2 <= (8 << 20) else _seq_tile(T, 512)
        q_spec = pl.BlockSpec((None, None, None, tq, Hd),
                              lambda bh, qi, ki: (0, bh // H, bh % H, qi, 0))
        k_spec = pl.BlockSpec((None, None, None, tk, Hd),
                              lambda bh, qi, ki: (1, bh // H, bh % H, ki, 0))
        v_spec = pl.BlockSpec((None, None, None, tk, Hd),
                              lambda bh, qi, ki: (2, bh // H, bh % H, ki, 0))
        o_spec = pl.BlockSpec((None, None, tq, Hd),
                              lambda bh, qi, ki: (bh // H, bh % H, qi, 0))

        attn_heads = pl.pallas_call(
            flash_attn_kernel,
            out_shape=jax.ShapeDtypeStruct((B, H, T, Hd), jnp.bfloat16),
            grid=(B * H, T // tq, T // tk),
            in_specs=[q_spec, k_spec, v_spec],
            out_specs=o_spec,
            scratch_shapes=[pltpu.VMEM((tq, 1), jnp.float32),
                            pltpu.VMEM((tq, 1), jnp.float32),
                            pltpu.VMEM((tq, Hd), jnp.float32)],
            compiler_params=pltpu.CompilerParams(
                dimension_semantics=("parallel", "parallel", "arbitrary"),
                vmem_limit_bytes=_VMEM_LIMIT),
        )(qkv, qkv, qkv)
        attn_weights = None

    # (B, H, T, Hd) -> (T, B, H*Hd): one contiguous transpose before the out-projection.
    attn2d = attn_heads.transpose(2, 0, 1, 3).reshape(M, E)
    attn_out = _tiled_linear(attn2d, prepared["wo_t"], prepared["bo"],
                             jnp.float32).reshape(T, B, E)
    return attn_out, attn_weights


# --------------------------- parameter init --------------------------------- #

def init_params(key, embed_dim):
    E = embed_dim

    def xavier(k, gain):
        bound = gain * math.sqrt(6.0 / (E + E))
        return jax.random.uniform(k, (E, E), jnp.float32, -bound, bound)

    def linear_bias(k):
        bound = 1.0 / math.sqrt(E)
        return jax.random.uniform(k, (E,), jnp.float32, -bound, bound)

    ks = jax.random.split(key, 7)
    g = 1.0 / math.sqrt(2.0)
    return {
        "wq": xavier(ks[0], g), "bq": linear_bias(ks[1]),
        "wk": xavier(ks[2], g), "bk": linear_bias(ks[3]),
        "wv": xavier(ks[4], g), "bv": linear_bias(ks[5]),
        "wo": xavier(ks[6], 1.0), "bo": jnp.zeros((E,), jnp.float32),
    }


# --------------------------- reference (pure JAX, f32) ----------------------- #

def reference(query, params, num_heads):
    T, B, E = query.shape
    H, Hd = num_heads, E // num_heads
    scaling = Hd ** (-0.5)
    lin = lambda x, w, b: x @ w.T + b
    q = lin(query, params["wq"], params["bq"]) * scaling
    k = lin(query, params["wk"], params["bk"])
    v = lin(query, params["wv"], params["bv"])
    reshape_h = lambda t: t.reshape(T, B * H, Hd).transpose(1, 0, 2)
    q, k, v = reshape_h(q), reshape_h(k), reshape_h(v)
    s = jnp.einsum("btd,bsd->bts", q, k)
    p = jax.nn.softmax(s, axis=-1)
    o = jnp.einsum("bts,bsd->btd", p, v)
    o = o.transpose(1, 0, 2).reshape(T, B, E)
    o = lin(o, params["wo"], params["bo"])
    return o, p.reshape(B, H, T, T).mean(axis=0)


# --------------------------------- main ------------------------------------- #

if __name__ == "__main__":
    embed_dim = 32
    num_heads = 4
    tgt_len = 8
    bsz = 2

    key = jax.random.PRNGKey(0)
    k_param, k_x = jax.random.split(key)
    params = init_params(k_param, embed_dim)
    prepared = prepare_params(params, num_heads)
    query = jax.random.normal(k_x, (tgt_len, bsz, embed_dim), jnp.float32)

    ref_attn, ref_w = reference(query, params, num_heads)

    # need_weights=True path (q-tiled softmax + in-kernel batch-mean of probs)
    attn, attn_weights = multihead_self_attention(query, prepared, num_heads,
                                                  need_weights=True)
    attn = jax.block_until_ready(attn)
    attn_weights = jax.block_until_ready(attn_weights)
    assert attn.shape == (tgt_len, bsz, embed_dim)
    assert attn_weights.shape == (num_heads, tgt_len, tgt_len)
    # bf16 matmul operands (f32 accumulation) -> relaxed tolerance vs. f32 reference.
    assert jnp.allclose(attn, ref_attn, atol=3e-2, rtol=3e-2)
    assert jnp.allclose(attn_weights, ref_w, atol=3e-2, rtol=3e-2)

    # need_weights=False path (flash-style, no probs materialized)
    attn_fast, no_w = multihead_self_attention(query, prepared, num_heads,
                                               need_weights=False)
    attn_fast = jax.block_until_ready(attn_fast)
    assert no_w is None
    assert jnp.allclose(attn_fast, ref_attn, atol=3e-2, rtol=3e-2)

    print("KERNEL_OK")
</pallas_src>

<mosaic_0001>
module attributes {stable_mosaic.version = 11 : i64} {
  func.func @linear_kernel(%arg0: i32, %arg1: i32, %arg2: memref<16x32xbf16, #tpu.memory_space<vmem>>, %arg3: memref<32x96xbf16, #tpu.memory_space<vmem>>, %arg4: memref<1x96xf32, #tpu.memory_space<vmem>>, %arg5: memref<16x96xbf16, #tpu.memory_space<vmem>>) attributes {dimension_semantics = [#tpu.dimension_semantics<parallel>, #tpu.dimension_semantics<parallel>], iteration_bounds = array<i64: 1, 1>, scalar_prefetch = 0 : i64, scratch_operands = 0 : i64, tpu.core_type = #tpu.core_type<tc>, window_params = [{transform_indices = @transform_0, window_bounds = array<i64: 16, 32>}, {transform_indices = @transform_1, window_bounds = array<i64: 32, 96>}, {transform_indices = @transform_2, window_bounds = array<i64: 1, 96>}, {transform_indices = @transform_3, window_bounds = array<i64: 16, 96>}]} {
    %c0 = arith.constant 0 : index
    %c0_0 = arith.constant 0 : index
    %0 = vector.load %arg2[%c0, %c0_0] : memref<16x32xbf16, #tpu.memory_space<vmem>>, vector<16x32xbf16>
    %c0_1 = arith.constant 0 : index
    %c0_2 = arith.constant 0 : index
    %1 = vector.load %arg3[%c0_1, %c0_2] : memref<32x96xbf16, #tpu.memory_space<vmem>>, vector<32x96xbf16>
    %cst = arith.constant dense<0.000000e+00> : vector<16x96xf32>
    %2 = tpu.matmul %0, %1, %cst {dimension_numbers = #tpu.dot_dimension_numbers<[1], [0], [0], [1], [0, 0, 1, 1], [], []>} : vector<16x32xbf16>, vector<32x96xbf16>, vector<16x96xf32> -> vector<16x96xf32>
    %c0_3 = arith.constant 0 : index
    %c0_4 = arith.constant 0 : index
    %3 = vector.load %arg4[%c0_3, %c0_4] : memref<1x96xf32, #tpu.memory_space<vmem>>, vector<1x96xf32>
    %4 = vector.broadcast %3 : vector<1x96xf32> to vector<16x96xf32>
    %5 = arith.addf %2, %4 : vector<16x96xf32>
    %6 = arith.truncf %5 : vector<16x96xf32> to vector<16x96xbf16>
    %c0_5 = arith.constant 0 : index
    %c0_6 = arith.constant 0 : index
    %7 = vector.load %arg5[%c0_5, %c0_6] : memref<16x96xbf16, #tpu.memory_space<vmem>>, vector<16x96xbf16>
    tpu.vector_store %arg5[%c0_5, %c0_6], %6 {strides = array<i32>} : memref<16x96xbf16, #tpu.memory_space<vmem>>, vector<16x96xbf16>,
    return
  }
  func.func @transform_0(%arg0: i32, %arg1: i32) -> (i32, i32) {
    %c0_i32 = arith.constant 0 : i32
    %c0_i32_0 = arith.constant 0 : i32
    return %arg0, %c0_i32 : i32, i32
  }
  func.func @transform_1(%arg0: i32, %arg1: i32) -> (i32, i32) {
    %c0_i32 = arith.constant 0 : i32
    %c0_i32_0 = arith.constant 0 : i32
    return %c0_i32, %arg1 : i32, i32
  }
  func.func @transform_2(%arg0: i32, %arg1: i32) -> (i32, i32) {
    %c0_i32 = arith.constant 0 : i32
    %c0_i32_0 = arith.constant 0 : i32
    return %c0_i32, %arg1 : i32, i32
  }
  func.func @transform_3(%arg0: i32, %arg1: i32) -> (i32, i32) {
    %c0_i32 = arith.constant 0 : i32
    return %arg0, %arg1 : i32, i32
  }
}

</mosaic_0001>

<bundles_post_ra>
// kernel: tpu_custom_call.1
= control target key start
LH: loop header
LB: loop body
LE: loop exit
PB: predicated region body
PF: predicated region fallthrough
CT: control target
= control target key end

     0   :  { %8 = vsyncpa [#allocation3], 0  ;;  %s292_s0 = inlined_call_operand.hbm [shape: bf16[16,32], index: 0, kind: input, shape index: {}]   ;;  %s293_s1 = inlined_call_operand.hbm [shape: bf16[32,96], index: 1, kind: input, shape index: {}]   ;;  %s294_s2 = inlined_call_operand.vmem [shape: f32[1,96], index: 2, kind: input, shape index: {}]   ;;  %s295_s3 = inlined_call_operand.hbm [shape: bf16[16,96], index: 3, kind: output, shape index: {}]  }
   0x1   :  { %9 = vsyncpa [#allocation6], 0 }
   0x2   :  { %10 = vsyncpa [#allocation4], 0  ;;  %s244_s12 = smov [#allocation2]  }
   0x3   :  { %s16_s13 = sshll.u32 %s244_s12, 4  ;;  %s17_s13 = int_to_ptr.vmem [resolvable:$true] %s16_s13 }
   0x4   :  { %s186_s14 = scalar_lea.vmem %s17_s13, 128  ;;  %p191_p1 = scmp.lt.s32.totalorder %s17_s13, %s17_s13 }
   0x5   :  { %p187_p0 = scmp.ne.s32.totalorder %s17_s13, %s186_s14  ;;  %p192_p2 = scmp.lt.s32.totalorder %s186_s14, %s186_s14 }
   0x7   :  { %p193_p3 = por %p192_p2, %p191_p1 }
   0x9   :  { %p194_p4 = pnand %p193_p3, %p187_p0 }
   0xb   :  { %197 = shalt.err (!%p194_p4)
}
   0xc   :  { %s245_s15 = smov 64   ;;  %s246_s16 = smov 4  }
   0xd   :  { %22 = dma.hbm_to_vmem [thread:$0]  %s292_s0, 128, %s17_s13, [#allocation3], %s245_s15, %s245_s15, %s246_s16  }
   0xe   :  { %s247_s19 = smov [#allocation5]  }
   0xf   :  { %s28_s20 = sshll.u32 %s247_s19, 4  ;;  %s29_s20 = int_to_ptr.vmem [resolvable:$true] %s28_s20 }
  0x10   :  { %s206_s21 = scalar_lea.vmem %s29_s20, 256  ;;  %p211_p6 = scmp.lt.s32.totalorder %s29_s20, %s29_s20 }
  0x11   :  { %p207_p5 = scmp.ne.s32.totalorder %s29_s20, %s206_s21  ;;  %p212_p7 = scmp.lt.s32.totalorder %s206_s21, %s206_s21 }
  0x13   :  { %p213_p8 = por %p212_p7, %p211_p6 }
  0x15   :  { %p214_p9 = pnand %p213_p8, %p207_p5 }
  0x17   :  { %217 = shalt.err (!%p214_p9)
}
  0x18   :  { %34 = dma.hbm_to_vmem [thread:$0]  %s293_s1, 256, %s29_s20, [#allocation6], %s245_s15, %s245_s15, %s246_s16  }
  0x19   :  { %238 = dma.done.wait [#allocation3], 128  }
  0x1a   :  { %239 = vsyncadd [#allocation3], 4294967168 }
  0x1b   :  { %240 = dma.done.wait [#allocation6], 256  }
  0x1c   :  { %241 = vsyncadd [#allocation6], 4294967040  ;;  %v248_v0 = vmov 0.0   ;;  %vm249_vm0 = vmmov 0   ;;  %v175_v1 = vld [vmem:[#allocation5 + $0x8] sm:$0xff]   ;;  %v176_v2 = vld [vmem:[#allocation5] sm:$0xff]  }
  0x1d   :  { %160 = vmatprep.subr.bf16.mxu0 %v248_v0  ;;  %164 = vmatprep.mubr.msk.bf16.mxu0 %vm249_vm0, %v248_v0  ;;  %v177_v3 = vld [vmem:[#allocation2] sm:$0xff]   ;;  %vm74_vm1 = vcmask 261120   ;;  %vm127_vm2 = vcmask 781312   ;;  %s250_s1 = smov [#allocation7]  }
  0x1e   :  { %161 = vmatpush3.bf16.msra.mxu0 %v175_v1  ;;  %v148_v4 = vld [vmem:[%s294_s2] ss:$0 sm:$0xff]  ;;  %s135_s25 = sshll.u32 %s250_s1, 4  ;;  %s136_s25 = int_to_ptr.vmem [resolvable:$true] %s135_s25 }
  0x1f   :  { %162 = vmatprep.subr.bf16.mxu0 %v248_v0  ;;  %s218_s26 = scalar_lea.vmem %s136_s25, 128  ;;  %p223_p11 = scmp.lt.s32.totalorder %s136_s25, %s136_s25 }
  0x20   :  { %p219_p10 = scmp.ne.s32.totalorder %s136_s25, %s218_s26  ;;  %p224_p12 = scmp.lt.s32.totalorder %s218_s26, %s218_s26 }
  0x22   :  { %163 = vmatpush3.bf16.msra.mxu0 %v176_v2  ;;  %p225_p13 = por %p224_p12, %p223_p11 }
  0x24   :  { %p226_p0 = pnand %p225_p13, %p219_p10 }
  0x25   :  { %165 = vmatmul.mubr.msk.bf16.vlgmr.msra.gmra.mxu0 %vm74_vm1, %v177_v3 }
  0xe5   :  { %v112_v5 = vpop.f32.mrf.mxu0 }
  0xe6   :  { %v113_v6 = vadd.f32 %v148_v4, %v112_v5 }
  0xe7   :  { %v166_v7 = vpop.f32.mrf.mxu0 }
  0xe8   :  { %v155_v8 = vpack.c.bf16 %v113_v6, %v113_v6 }
  0xe9   :  { %v115_v9 = vpop.f32.mrf.mxu0 }
  0xea   :  { %v116_v10 = vadd.f32 %v148_v4, %v115_v9  ;;  %128 = vst.msk [vmem:[#allocation7] sm:$0xf] %vm127_vm2, %v155_v8 }
  0xeb   :  { %v167_v11 = vpop.f32.mrf.mxu0 }
  0xec   :  { %v156_v12 = vpack.c.bf16 %v116_v10, %v116_v10 }
  0xee   :  { %129 = vst.msk [vmem:[#allocation7 + $0x4] sm:$0xf] %vm127_vm2, %v156_v12 }
  0xef   :  { %229 = shalt.err (!%p226_p0)
}
  0xf0   :  { %141 = dma.vmem_to_hbm [thread:$0]  %s136_s25, 128, %s295_s3, [#allocation4], %s245_s15, %s245_s15, %s246_s16  }
  0xf1   :  { %242 = dma.done.wait [#allocation4], 128  }
  0xf2   :  { %243 = vsyncadd [#allocation4], 4294967168 }
  0xf3   :  { %145 = vsyncpa [#allocation3], 1 }
  0xf4   :  { %146 = vsyncpa [#allocation6], 1 }
  0xf5   :  { %147 = vsyncpa [#allocation4], 1 }

</bundles_post_ra>
